<compile_context>
chip_gen: v7x
topology: tpu7x:2x2x1
jax: 0.10.0
libtpu: 0.0.40
codegen_flags: <defaults>
</compile_context>

<pallas_src>
import jax
import jax.numpy as jnp
from jax.experimental import pallas as pl
from jax.experimental.pallas import tpu as pltpu


_LANES = 512                 # lane-dense last dim (multiple of 128)
_SMALL_BYTES = 1 << 20       # inputs strictly below 1 MiB use the jnp fast path


def _round_up(x: int, m: int) -> int:
    return ((x + m - 1) // m) * m


def _cdiv(a: int, b: int) -> int:
    return -(-a // b)


def _block_target_bytes() -> int:
    # Per-generation tile target: ~4 MiB on v6e/v7x (fast HBM makes the
    # ~0.35us per-grid-step overhead visible with small tiles); ~2 MiB on
    # v5e (16 MiB default scoped VMEM, and BlockSpec double-buffers both the
    # input and the output tile -> pipelined footprint = 4x tile).
    try:
        kind = jax.devices()[0].device_kind.lower()
    except Exception:
        return 2 << 20
    if "v6" in kind or "v7" in kind:
        return 4 << 20
    return 2 << 20


def _affine_kernel(w_ref, bc_ref, x_ref, o_ref):
    # w_ref / bc_ref are (1,) scalars in SMEM; x_ref/o_ref are lane-dense
    # (block_rows, lanes) VMEM tiles.  Single fused VPU affine per tile.
    # Compute in f32 (bf16 inputs differ by <=1 ulp from a native bf16 Linear).
    w = w_ref[0]
    bc = bc_ref[0]
    y = x_ref[...].astype(jnp.float32) * w + bc
    o_ref[...] = y.astype(o_ref.dtype)


def _affine_pallas_2d(x2d, w, bc):
    """Run the affine kernel over a lane-dense (rows, lanes) slab."""
    rows, lanes = x2d.shape
    itemsize = x2d.dtype.itemsize

    max_rows = max(8, (_block_target_bytes() // (lanes * itemsize)) // 8 * 8)
    # Never collapse to a single grid step: keeps DMA/compute pipelining and
    # lets v7x's two TensorCores split the "parallel" axis.
    block_rows = max(8, min(max_rows, _round_up(_cdiv(rows, 2), 8)))
    grid = (_cdiv(rows, block_rows),)  # ragged last block: Pallas masks OOB writes

    smem_spec = pl.BlockSpec(memory_space=pltpu.MemorySpace.SMEM)
    tile_spec = pl.BlockSpec((block_rows, lanes), lambda i: (i, 0))

    return pl.pallas_call(
        _affine_kernel,
        out_shape=jax.ShapeDtypeStruct((rows, lanes), x2d.dtype),
        grid=grid,
        in_specs=[
            smem_spec,   # weight scalar
            smem_spec,   # (bias + buffer) scalar
            tile_spec,   # x tile
        ],
        out_specs=tile_spec,
        compiler_params=pltpu.CompilerParams(
            dimension_semantics=("parallel",),   # megacore-friendly on v7x
        ),
    )(w, bc, x2d)


def mock_module_forward(x, weight, bias, buffer):
    """MockModule.forward: x @ weight.T + bias + buffer.

    x: (..., 1). weight: (1,1), bias: (1,), buffer: (1,).
    Returns an array with the same shape/dtype as x.
    """
    orig_shape = x.shape
    assert orig_shape[-1] == 1, "Linear(1, 1) expects last dim == 1"
    n = x.size
    dtype = x.dtype

    # Fold bias + buffer into one scalar; parameters kept in f32.
    w = weight.reshape((1,)).astype(jnp.float32)
    bc = (bias.reshape((1,)) + buffer.reshape((1,))).astype(jnp.float32)

    # ---- small-input fast path (also covers n == 0) --------------------
    if n * dtype.itemsize < _SMALL_BYTES:
        y = (x.astype(jnp.float32) * w[0] + bc[0]).astype(dtype)
        return y.reshape(orig_shape)

    flat = x.reshape(-1)  # contiguous, no-copy

    # ---- dense path: n divisible by a lane width -> no pad, no slice ---
    for lanes in (_LANES, 256, 128):
        if n % lanes == 0:
            out2d = _affine_pallas_2d(flat.reshape(n // lanes, lanes), w, bc)
            return out2d.reshape(orig_shape)

    # ---- ragged fallback: Pallas on the lane-multiple bulk, tiny tail in
    # plain jnp, stitched with one concatenate (cheaper than pad + [:n]).
    n_bulk = (n // _LANES) * _LANES
    bulk2d = flat[:n_bulk].reshape(n_bulk // _LANES, _LANES)
    bulk_out = _affine_pallas_2d(bulk2d, w, bc)
    tail = flat[n_bulk:]
    tail_out = (tail.astype(jnp.float32) * w[0] + bc[0]).astype(dtype)
    return jnp.concatenate([bulk_out.reshape(-1), tail_out]).reshape(orig_shape)


if __name__ == "__main__":
    key = jax.random.PRNGKey(0)

    # Deterministic parameters (shapes from MockModule.__init__):
    #   l1 = nn.Linear(1, 1) -> weight (1, 1), bias (1,);  buffer = ones(1)
    weight = jnp.array([[0.5]], dtype=jnp.float32)
    bias = jnp.array([-0.25], dtype=jnp.float32)
    buffer = jnp.ones((1,), dtype=jnp.float32)

    k1, k2, k3, k4 = jax.random.split(key, 4)
    test_inputs = [
        jax.random.normal(k1, (8, 1), dtype=jnp.float32),       # jnp fast path
        jax.random.normal(k2, (1000, 1), dtype=jnp.float32),    # jnp fast path
        jax.random.normal(k3, (262144, 1), dtype=jnp.float32),  # Pallas, dense no-copy path
        jax.random.normal(k4, (300033, 1), dtype=jnp.float32),  # Pallas, ragged block + jnp tail
    ]

    for x in test_inputs:
        out = mock_module_forward(x, weight, bias, buffer)
        jax.block_until_ready(out)
        ref = x @ weight.T + bias + buffer
        assert out.shape == ref.shape
        assert out.dtype == x.dtype
        assert jnp.allclose(out, ref, atol=1e-6), "mismatch vs reference"

    print("KERNEL_OK")
</pallas_src>

<mosaic_0001>
module attributes {stable_mosaic.version = 11 : i64} {
  func.func @_affine_kernel(%arg0: i32, %arg1: memref<1xf32, #tpu.memory_space<smem>>, %arg2: memref<1xf32, #tpu.memory_space<smem>>, %arg3: memref<256x512xf32, #tpu.memory_space<vmem>>, %arg4: memref<256x512xf32, #tpu.memory_space<vmem>>) attributes {dimension_semantics = [#tpu.dimension_semantics<parallel>], iteration_bounds = array<i64: 2>, scalar_prefetch = 0 : i64, scratch_operands = 0 : i64, tpu.core_type = #tpu.core_type<tc>, window_params = [{transform_indices = @transform_0, window_bounds = array<i64: 1>}, {transform_indices = @transform_1, window_bounds = array<i64: 1>}, {transform_indices = @transform_2, window_bounds = array<i64: 256, 512>}, {transform_indices = @transform_3, window_bounds = array<i64: 256, 512>}]} {
    %c0 = arith.constant 0 : index
    %0 = memref.load %arg1[%c0] : memref<1xf32, #tpu.memory_space<smem>>
    %c0_0 = arith.constant 0 : index
    %1 = memref.load %arg2[%c0_0] : memref<1xf32, #tpu.memory_space<smem>>
    %c0_1 = arith.constant 0 : index
    %c0_2 = arith.constant 0 : index
    %2 = vector.load %arg3[%c0_1, %c0_2] : memref<256x512xf32, #tpu.memory_space<vmem>>, vector<256x512xf32>
    %3 = vector.broadcast %0 : f32 to vector<256x512xf32>
    %4 = arith.mulf %2, %3 : vector<256x512xf32>
    %5 = vector.broadcast %1 : f32 to vector<256x512xf32>
    %6 = arith.addf %4, %5 : vector<256x512xf32>
    %c0_3 = arith.constant 0 : index
    %c0_4 = arith.constant 0 : index
    %7 = vector.load %arg4[%c0_3, %c0_4] : memref<256x512xf32, #tpu.memory_space<vmem>>, vector<256x512xf32>
    tpu.vector_store %arg4[%c0_3, %c0_4], %6 {strides = array<i32>} : memref<256x512xf32, #tpu.memory_space<vmem>>, vector<256x512xf32>,
    return
  }
  func.func @transform_0(%arg0: i32) -> i32 {
    %c0_i32 = arith.constant 0 : i32
    %c0_i32_0 = arith.constant 0 : i32
    return %c0_i32 : i32
  }
  func.func @transform_1(%arg0: i32) -> i32 {
    %c0_i32 = arith.constant 0 : i32
    %c0_i32_0 = arith.constant 0 : i32
    return %c0_i32 : i32
  }
  func.func @transform_2(%arg0: i32) -> (i32, i32) {
    %c0_i32 = arith.constant 0 : i32
    %c0_i32_0 = arith.constant 0 : i32
    return %arg0, %c0_i32 : i32, i32
  }
  func.func @transform_3(%arg0: i32) -> (i32, i32) {
    %c0_i32 = arith.constant 0 : i32
    %c0_i32_0 = arith.constant 0 : i32
    return %arg0, %c0_i32 : i32, i32
  }
}

</mosaic_0001>

<bundles_post_ra>
// kernel: tpu_custom_call.1
= control target key start
LH: loop header
LB: loop body
LE: loop exit
PB: predicated region body
PF: predicated region fallthrough
CT: control target
= control target key end

     0   :  { %s1685_s0 = inlined_call_operand.<no memory space> [shape: f32[1], index: 0, kind: input, shape index: {}]   ;;  %s1686_s1 = inlined_call_operand.<no memory space> [shape: f32[1], index: 1, kind: input, shape index: {}]   ;;  %s1687_s2 = inlined_call_operand.hbm [shape: f32[512,512], index: 2, kind: input, shape index: {}]   ;;  %s1688_s3 = inlined_call_operand.hbm [shape: f32[512,512], index: 3, kind: output, shape index: {}]  }
   0x1   :  { %8 = sst [smem:[#allocation2]] %s1685_s0 }
   0x2   :  { %9 = sst [smem:[#allocation3]] %s1686_s1 }
   0x3   :  { %10 = vsyncpa [#allocation5], 0 }
   0x4   :  { %12 = vsyncpa [#allocation5 + $0x1], 0 }
   0x5   :  { %13 = vsyncpa [#allocation6], 0 }
   0x6   :  { %15 = vsyncpa [#allocation6 + $0x1], 0  ;;  %s998_s16 = smov 0   ;;  %s1000_s17 = smov 0  }
   0x7   :  { %s1002_s18 = smov 0   ;;  %s1004_s19 = smov 0  }
   0x8 LB: > { %s1019_s0 = sadd.s32 4294967295, %s964_s19   ;;  %s798_s1 = sadd.s32 4294967294, %s964_s19   ;;  %s964_s19 = sphi %s1004_s19, %s1701_s19   ;;  %s960_s18 = sphi %s1002_s18, %s1700_s18   ;;  %s956_s17 = sphi %s1000_s17, %s1699_s17   ;;  %s952_s16 = sphi %s998_s16, %s1698_s16  }
   0x9   : > { %s1023_s20 = sadd.s32 1, %s964_s19   ;;  %s70_s21 = sadd.s32 1, %s960_s18 }
   0xa   : > { %s67_s22 = ssub.s32 %s964_s19, %s1023_s20  ;;  %p77_p0 = scmp.ne.s32.totalorder %s960_s18, %s956_s17 }
   0xb   : > { %p68_p1 = scmp.eq.s32.totalorder %s67_s22, 0  ;;  %p78_p2 = scmp.eq.s32.totalorder %s964_s19, 0 }
   0xc   : > { %p83_p3 = scmp.ne.s32.totalorder %s956_s17, %s952_s16  ;;  %p84_p4 = scmp.eq.s32.totalorder %s1019_s0, 0 }
   0xd   : > { %s1035_s23 = scalar_select %p68_p1, %s960_s18, %s70_s21  }
   0xe   : > { %p1037_p5 = por %p78_p2, %p77_p0  ;;  %p1041_p6 = por %p84_p4, %p83_p3 }
   0xf   : > { %p107_p7 = scmp.eq.s32.totalorder %s1019_s0, 1  ;;  %p113_p8 = scmp.eq.s32.totalorder %s798_s1, 1 }
  0x10   : > { %p830_p10 = scmp.lt.s32.totalorder %s964_s19, 2  ;;  %s139_s28 = sand.u32 1, %s960_s18  }
  0x11   : > { %p1048_p11 = por %p107_p7, %p77_p0  ;;  %p1052_p12 = por %p113_p8, %p83_p3 }
  0x12   : > { %s815_s29 = sshll.u32 %s964_s19, 14  ;;  %s801_s30 = sshll.u32 %s139_s28, 10 }
  0x13   : > { %s1692_s26 = scalar_select %p1048_p11, 1, 0 }
  0x14   : > { %s1693_s27 = scalar_select %p1052_p12, 1, 0 }
  0x15   : > { %s1061_s6 = scalar_lea.hbm %s1687_s2, %s815_s29  ;;  %s143_s7 = scalar_lea.vmem [#allocation4], %s801_s30 }
  0x16   : > { %s151_s8 = sshll.u32 %s143_s7, 4  ;;  %p1065_p13 = pnand %p830_p10, %p1037_p5  ;;  %s1069_s8 = int_to_ptr.vmem [resolvable:$true] %s151_s8 }
  0x17   : > { %s1071_s10 = scalar_lea.sflag [#allocation5], %s139_s28  ;;  %s868_s11 = scalar_lea.hbm %s1061_s6, 16384 }
  0x18   : > { %p869_p0 = scmp.ne.s32.totalorder %s1061_s6, %s868_s11  ;;  %p870_p1 = pneg %p1065_p13 }
  0x19   : > { %s873_s14 = scalar_lea.hbm %s1687_s2, 32768  ;;  %p874_p4 = scmp.lt.u32.totalorder %s1061_s6, %s1687_s2 }
  0x1a   : > { %p871_p2 = pnand %p870_p1, %p869_p0  ;;  %p875_p5 = scmp.lt.u32.totalorder %s873_s14, %s868_s11 }
  0x1b   : > { %p877_p8 = scmp.lt.u32.totalorder %s868_s11, %s1061_s6 }
  0x1c   : > { %p872_p3 = pneg %p871_p2  ;;  %p876_p7 = por %p875_p5, %p874_p4 }
  0x1e   : > { %p878_p10 = por %p877_p8, %p876_p7 }
  0x20   : > { %p879_p9 = pnand %p878_p10, %p872_p3 }
  0x22   : > { %882 = shalt.err (!%p879_p9)
}
  0x23   : > { %s883_s21 = scalar_lea.vmem %s1069_s8, 16384  ;;  %s966_s22 = smov [#allocation4]  }
  0x24   : > { %p884_p0 = scmp.ne.s32.totalorder %s1069_s8, %s883_s21  ;;  %s888_s24 = sshll.u32 %s966_s22, 4  ;;  %s889_s24 = int_to_ptr.vmem [resolvable:$false] %s888_s24 }
  0x25   : > { %s890_s28 = scalar_lea.vmem %s889_s24, 32768  ;;  %p891_p11 = scmp.lt.s32.totalorder %s1069_s8, %s889_s24 }
  0x26   : > { %p886_p2 = pnand %p884_p0, %p870_p1  ;;  %p892_p4 = scmp.lt.s32.totalorder %s890_s28, %s883_s21 }
  0x28   : > { %p887_p12 = pneg %p886_p2  ;;  %p893_p5 = por %p892_p4, %p891_p11 }
  0x2a   : > { %p894_p7 = pnand %p893_p5, %p887_p12 }
  0x2c   : > { %897 = shalt.err (!%p894_p7)
}
  0x2d   : > { %s967_s29 = smov 512   ;;  %s968_s30 = smov 32  }
  0x2e   : > { %825 = dma.hbm_to_vmem [thread:$0]  (!%p1065_p13), %s1061_s6, 16384, %s1069_s8, %s1071_s10, %s967_s29, %s967_s29, %s968_s30  }
  0x2f   : > { %p805_p9 = scmp.ge.s32.totalorder %s964_s19, 1  ;;  %p159_p1 = scmp.lt.s32.totalorder %s964_s19, 3 }
  0x31   : > { %p160_p3 = pnand %p805_p9, %p159_p1 }
  0x32   : > { %s1102_s4 = sand.u32 (!%p160_p3), 1, %s956_s17  }
  0x33   : > { %163 = sbr.rel (%p160_p3) target bundleno = 160 (0xa0), region = 32  ;;  %s806_s5 = sshll.u32 (!%p160_p3), %s1102_s4, 10 }
  0x34   : > { %s166_s7 = scalar_lea.sflag (!%p160_p3), [#allocation5], %s1102_s4  ;;  %s1108_s11 = scalar_lea.vmem (!%p160_p3), [#allocation4], %s806_s5 }
  0x3a   : > { %943 = dma.done.wait (%p1041_p6), %s166_s7, 16384  }
  0x3b   : > { %945 = vsyncadd (%p1041_p6), %s166_s7, 4294950912  ;;  %s194_s6 = sld [smem:[#allocation2]]  ;;  %v196_v0 = vld [vmem:[%s1108_s11] sm:$0xff]  ;;  %v197_v3 = vld [vmem:[%s1108_s11 + $0x8] sm:$0xff]  ;;  %s1147_s25 = scalar_lea.vmem [#allocation7], %s806_s5 }
  0x3c   : > { %s195_s8 = sld [smem:[#allocation3]]  ;;  %v198_v6 = vld [vmem:[%s1108_s11 + $0x10] sm:$0xff]  ;;  %v199_v7 = vld [vmem:[%s1108_s11 + $0x18] sm:$0xff]  ;;  %v200_v8 = vld [vmem:[%s1108_s11 + $0x20] sm:$0xff]  ;;  %s817_s9 = sshll.u32 %s1019_s0, 14 }
  0x3d   : > { %v201_v12 = vld [vmem:[%s1108_s11 + $0x28] sm:$0xff]  ;;  %v202_v13 = vld [vmem:[%s1108_s11 + $0x30] sm:$0xff]  ;;  %v203_v14 = vld [vmem:[%s1108_s11 + $0x38] sm:$0xff]  ;;  %s725_s10 = sshll.u32 %s1147_s25, 4  ;;  %s1632_s13 = scalar_lea.hbm %s1688_s3, %s817_s9  ;;  %s1634_s10 = int_to_ptr.vmem [resolvable:$true] %s725_s10 }
  0x3e   : > { %v204_v19 = vld [vmem:[%s1108_s11 + $0x40] sm:$0xff]  ;;  %v205_v20 = vld [vmem:[%s1108_s11 + $0x48] sm:$0xff]  ;;  %v206_v21 = vld [vmem:[%s1108_s11 + $0x50] sm:$0xff]  ;;  %s711_s14 = scalar_lea.sflag [#allocation6], %s1102_s4  ;;  %s898_s15 = scalar_lea.vmem %s1634_s10, 16384 }
  0x3f   : > { %v207_v26 = vld [vmem:[%s1108_s11 + $0x58] sm:$0xff]  ;;  %v208_v27 = vld [vmem:[%s1108_s11 + $0x60] sm:$0xff]  ;;  %v209_v28 = vld [vmem:[%s1108_s11 + $0x68] sm:$0xff]  ;;  %p899_p6 = scmp.ne.s32.totalorder %s1634_s10, %s898_s15  ;;  %p1695_p11 = scmp.ne.s32.totalorder %s1692_s26, 0 }
  0x40   : > { %v210_v33 = vld [vmem:[%s1108_s11 + $0x70] sm:$0xff]  ;;  %v211_v34 = vld [vmem:[%s1108_s11 + $0x78] sm:$0xff]  ;;  %v212_v39 = vld [vmem:[%s1108_s11 + $0x80] sm:$0xff]  ;;  %s969_s1 = smov [#allocation7]  }
  0x41   : > { %v1115_v1 = vstv %s194_s6  ;;  %v213_v40 = vld [vmem:[%s1108_s11 + $0x88] sm:$0xff]  ;;  %v214_v45 = vld [vmem:[%s1108_s11 + $0x90] sm:$0xff]  ;;  %v215_v46 = vld [vmem:[%s1108_s11 + $0x98] sm:$0xff]  ;;  %p900_p12 = pnand %p899_p6, %p1695_p11  ;;  %s902_s21 = sshll.u32 %s969_s1, 4  ;;  %s903_s21 = int_to_ptr.vmem [resolvable:$false] %s902_s21 }
  0x42   : > { %v1117_v2 = vstv %s195_s8  ;;  %v325_v4 = vmul.f32 %v1115_v1, %v196_v0  ;;  %v326_v5 = vmul.f32 %v1115_v1, %v197_v3  ;;  %v327_v9 = vmul.f32 %v1115_v1, %v198_v6  ;;  %v216_v47 = vld [vmem:[%s1108_s11 + $0xa0] sm:$0xff]  ;;  %v217_v52 = vld [vmem:[%s1108_s11 + $0xa8] sm:$0xff]  ;;  %v218_v53 = vld [vmem:[%s1108_s11 + $0xb0] sm:$0xff]  ;;  %s904_s22 = scalar_lea.vmem %s903_s21, 32768  ;;  %p905_p8 = scmp.lt.s32.totalorder %s1634_s10, %s903_s21 }
  0x43   : > { %v328_v10 = vmul.f32 %v1115_v1, %v199_v7  ;;  %v329_v11 = vmul.f32 %v1115_v1, %v200_v8  ;;  %v330_v17 = vmul.f32 %v1115_v1, %v201_v12  ;;  %v331_v18 = vmul.f32 %v1115_v1, %v202_v13  ;;  %v219_v58 = vld [vmem:[%s1108_s11 + $0xb8] sm:$0xff]  ;;  %v220_v63 = vld [vmem:[%s1108_s11 + $0xc0] sm:$0xff]  ;;  %v221_v0 = vld [vmem:[%s1108_s11 + $0xc8] sm:$0xff]  ;;  %p901_p13 = pneg %p900_p12  ;;  %p906_p10 = scmp.lt.s32.totalorder %s904_s22, %s898_s15 }
  0x44   : > { %v454_v15 = vadd.f32 %v1117_v2, %v325_v4  ;;  %v455_v16 = vadd.f32 %v1117_v2, %v326_v5  ;;  %v456_v22 = vadd.f32 %v1117_v2, %v327_v9  ;;  %v332_v25 = vmul.f32 %v1115_v1, %v203_v14  ;;  %v222_v7 = vld [vmem:[%s1108_s11 + $0xd0] sm:$0xff]  ;;  %v223_v8 = vld [vmem:[%s1108_s11 + $0xd8] sm:$0xff]  ;;  %v224_v9 = vld [vmem:[%s1108_s11 + $0xe0] sm:$0xff] }
  0x45   : > { %v457_v23 = vadd.f32 %v1117_v2, %v328_v10  ;;  %v458_v24 = vadd.f32 %v1117_v2, %v329_v11  ;;  %v459_v29 = vadd.f32 %v1117_v2, %v330_v17  ;;  %v460_v30 = vadd.f32 %v1117_v2, %v331_v18  ;;  %v225_v14 = vld [vmem:[%s1108_s11 + $0xe8] sm:$0xff]  ;;  %p907_p0 = por %p906_p10, %p905_p8 }
  0x46   : > { %582 = vst [vmem:[%s1147_s25] sm:$0xff] %v454_v15  ;;  %583 = vst [vmem:[%s1147_s25 + $0x8] sm:$0xff] %v455_v16  ;;  %v333_v31 = vmul.f32 %v1115_v1, %v204_v19  ;;  %v334_v32 = vmul.f32 %v1115_v1, %v205_v20  ;;  %v461_v35 = vadd.f32 %v1117_v2, %v332_v25  ;;  %v226_v15 = vld [vmem:[%s1108_s11 + $0xf0] sm:$0xff]  ;;  %v227_v20 = vld [vmem:[%s1108_s11 + $0xf8] sm:$0xff] }
  0x47   : > { %584 = vst [vmem:[%s1147_s25 + $0x10] sm:$0xff] %v456_v22  ;;  %585 = vst [vmem:[%s1147_s25 + $0x18] sm:$0xff] %v457_v23  ;;  %v335_v36 = vmul.f32 %v1115_v1, %v206_v21  ;;  %v336_v37 = vmul.f32 %v1115_v1, %v207_v26  ;;  %v337_v38 = vmul.f32 %v1115_v1, %v208_v27  ;;  %v228_v25 = vld [vmem:[%s1108_s11 + $0x100] sm:$0xff]  ;;  %v229_v26 = vld [vmem:[%s1108_s11 + $0x108] sm:$0xff]  ;;  %p908_p2 = pnand %p907_p0, %p901_p13 }
  0x48   : > { %586 = vst [vmem:[%s1147_s25 + $0x20] sm:$0xff] %v458_v24  ;;  %587 = vst [vmem:[%s1147_s25 + $0x28] sm:$0xff] %v459_v29  ;;  %v462_v41 = vadd.f32 %v1117_v2, %v333_v31  ;;  %v463_v42 = vadd.f32 %v1117_v2, %v334_v32  ;;  %v338_v43 = vmul.f32 %v1115_v1, %v209_v28  ;;  %v230_v31 = vld [vmem:[%s1108_s11 + $0x110] sm:$0xff]  ;;  %v231_v32 = vld [vmem:[%s1108_s11 + $0x118] sm:$0xff] }
  0x49   : > { %588 = vst [vmem:[%s1147_s25 + $0x30] sm:$0xff] %v460_v30  ;;  %v339_v44 = vmul.f32 %v1115_v1, %v210_v33  ;;  %589 = vst [vmem:[%s1147_s25 + $0x38] sm:$0xff] %v461_v35  ;;  %v464_v48 = vadd.f32 %v1117_v2, %v335_v36  ;;  %v465_v49 = vadd.f32 %v1117_v2, %v336_v37  ;;  %v232_v33 = vld [vmem:[%s1108_s11 + $0x120] sm:$0xff] }
  0x4a   : > { %v466_v50 = vadd.f32 %v1117_v2, %v337_v38  ;;  %v340_v51 = vmul.f32 %v1115_v1, %v211_v34  ;;  %590 = vst [vmem:[%s1147_s25 + $0x40] sm:$0xff] %v462_v41  ;;  %591 = vst [vmem:[%s1147_s25 + $0x48] sm:$0xff] %v463_v42  ;;  %v467_v54 = vadd.f32 %v1117_v2, %v338_v43  ;;  %v233_v38 = vld [vmem:[%s1108_s11 + $0x128] sm:$0xff] }
  0x4b   : > { %v468_v55 = vadd.f32 %v1117_v2, %v339_v44  ;;  %v341_v56 = vmul.f32 %v1115_v1, %v212_v39  ;;  %v342_v57 = vmul.f32 %v1115_v1, %v213_v40  ;;  %592 = vst [vmem:[%s1147_s25 + $0x50] sm:$0xff] %v464_v48  ;;  %593 = vst [vmem:[%s1147_s25 + $0x58] sm:$0xff] %v465_v49  ;;  %v234_v39 = vld [vmem:[%s1108_s11 + $0x130] sm:$0xff]  ;;  %v235_v44 = vld [vmem:[%s1108_s11 + $0x138] sm:$0xff] }
  0x4c   : > { %594 = vst [vmem:[%s1147_s25 + $0x60] sm:$0xff] %v466_v50  ;;  %v469_v59 = vadd.f32 %v1117_v2, %v340_v51  ;;  %v343_v60 = vmul.f32 %v1115_v1, %v214_v45  ;;  %v344_v61 = vmul.f32 %v1115_v1, %v215_v46  ;;  %v345_v62 = vmul.f32 %v1115_v1, %v216_v47  ;;  %v236_v49 = vld [vmem:[%s1108_s11 + $0x140] sm:$0xff]  ;;  %v237_v50 = vld [vmem:[%s1108_s11 + $0x148] sm:$0xff] }
  0x4d   : > { %595 = vst [vmem:[%s1147_s25 + $0x68] sm:$0xff] %v467_v54  ;;  %596 = vst [vmem:[%s1147_s25 + $0x70] sm:$0xff] %v468_v55  ;;  %v470_v3 = vadd.f32 %v1117_v2, %v341_v56  ;;  %v471_v4 = vadd.f32 %v1117_v2, %v342_v57  ;;  %v346_v5 = vmul.f32 %v1115_v1, %v217_v52  ;;  %v238_v55 = vld [vmem:[%s1108_s11 + $0x150] sm:$0xff]  ;;  %v239_v56 = vld [vmem:[%s1108_s11 + $0x158] sm:$0xff] }
  0x4e   : > { %v347_v6 = vmul.f32 %v1115_v1, %v218_v53  ;;  %597 = vst [vmem:[%s1147_s25 + $0x78] sm:$0xff] %v469_v59  ;;  %v472_v10 = vadd.f32 %v1117_v2, %v343_v60  ;;  %v473_v11 = vadd.f32 %v1117_v2, %v344_v61  ;;  %v474_v12 = vadd.f32 %v1117_v2, %v345_v62  ;;  %v240_v57 = vld [vmem:[%s1108_s11 + $0x160] sm:$0xff]  ;;  %v241_v62 = vld [vmem:[%s1108_s11 + $0x168] sm:$0xff] }
  0x4f   : > { %v348_v13 = vmul.f32 %v1115_v1, %v219_v58  ;;  %598 = vst [vmem:[%s1147_s25 + $0x80] sm:$0xff] %v470_v3  ;;  %599 = vst [vmem:[%s1147_s25 + $0x88] sm:$0xff] %v471_v4  ;;  %v475_v16 = vadd.f32 %v1117_v2, %v346_v5  ;;  %v349_v18 = vmul.f32 %v1115_v1, %v220_v63  ;;  %v242_v63 = vld [vmem:[%s1108_s11 + $0x170] sm:$0xff] }
  0x50   : > { %v476_v17 = vadd.f32 %v1117_v2, %v347_v6  ;;  %v350_v19 = vmul.f32 %v1115_v1, %v221_v0  ;;  %600 = vst [vmem:[%s1147_s25 + $0x90] sm:$0xff] %v472_v10  ;;  %601 = vst [vmem:[%s1147_s25 + $0x98] sm:$0xff] %v473_v11  ;;  %v351_v22 = vmul.f32 %v1115_v1, %v222_v7  ;;  %v243_v6 = vld [vmem:[%s1108_s11 + $0x178] sm:$0xff]  ;;  %v244_v11 = vld [vmem:[%s1108_s11 + $0x180] sm:$0xff] }
  0x51   : > { %602 = vst [vmem:[%s1147_s25 + $0xa0] sm:$0xff] %v474_v12  ;;  %v477_v21 = vadd.f32 %v1117_v2, %v348_v13  ;;  %v352_v23 = vmul.f32 %v1115_v1, %v223_v8  ;;  %v353_v24 = vmul.f32 %v1115_v1, %v224_v9  ;;  %603 = vst [vmem:[%s1147_s25 + $0xa8] sm:$0xff] %v475_v16  ;;  %v245_v12 = vld [vmem:[%s1108_s11 + $0x188] sm:$0xff] }
  0x52   : > { %604 = vst [vmem:[%s1147_s25 + $0xb0] sm:$0xff] %v476_v17  ;;  %v478_v27 = vadd.f32 %v1117_v2, %v349_v18  ;;  %v479_v28 = vadd.f32 %v1117_v2, %v350_v19  ;;  %v354_v29 = vmul.f32 %v1115_v1, %v225_v14  ;;  %v355_v30 = vmul.f32 %v1115_v1, %v226_v15  ;;  %v246_v17 = vld [vmem:[%s1108_s11 + $0x190] sm:$0xff]  ;;  %v247_v18 = vld [vmem:[%s1108_s11 + $0x198] sm:$0xff]  ;;  %v248_v19 = vld [vmem:[%s1108_s11 + $0x1a0] sm:$0xff] }
  0x53   : > { %605 = vst [vmem:[%s1147_s25 + $0xb8] sm:$0xff] %v477_v21  ;;  %v480_v34 = vadd.f32 %v1117_v2, %v351_v22  ;;  %v481_v35 = vadd.f32 %v1117_v2, %v352_v23  ;;  %v482_v36 = vadd.f32 %v1117_v2, %v353_v24  ;;  %v356_v37 = vmul.f32 %v1115_v1, %v227_v20  ;;  %v249_v24 = vld [vmem:[%s1108_s11 + $0x1a8] sm:$0xff] }
  0x54   : > { %606 = vst [vmem:[%s1147_s25 + $0xc0] sm:$0xff] %v478_v27  ;;  %607 = vst [vmem:[%s1147_s25 + $0xc8] sm:$0xff] %v479_v28  ;;  %v483_v40 = vadd.f32 %v1117_v2, %v354_v29  ;;  %v484_v41 = vadd.f32 %v1117_v2, %v355_v30  ;;  %v357_v42 = vmul.f32 %v1115_v1, %v228_v25  ;;  %v250_v25 = vld [vmem:[%s1108_s11 + $0x1b0] sm:$0xff]  ;;  %v251_v30 = vld [vmem:[%s1108_s11 + $0x1b8] sm:$0xff] }
  0x55   : > { %v358_v43 = vmul.f32 %v1115_v1, %v229_v26  ;;  %608 = vst [vmem:[%s1147_s25 + $0xd0] sm:$0xff] %v480_v34  ;;  %609 = vst [vmem:[%s1147_s25 + $0xd8] sm:$0xff] %v481_v35  ;;  %v485_v45 = vadd.f32 %v1117_v2, %v356_v37  ;;  %v359_v46 = vmul.f32 %v1115_v1, %v230_v31  ;;  %v252_v35 = vld [vmem:[%s1108_s11 + $0x1c0] sm:$0xff] }
  0x56   : > { %610 = vst [vmem:[%s1147_s25 + $0xe0] sm:$0xff] %v482_v36  ;;  %v360_v47 = vmul.f32 %v1115_v1, %v231_v32  ;;  %v361_v48 = vmul.f32 %v1115_v1, %v232_v33  ;;  %611 = vst [vmem:[%s1147_s25 + $0xe8] sm:$0xff] %v483_v40  ;;  %v486_v51 = vadd.f32 %v1117_v2, %v357_v42  ;;  %v253_v36 = vld [vmem:[%s1108_s11 + $0x1c8] sm:$0xff]  ;;  %v255_v42 = vld [vmem:[%s1108_s11 + $0x1d8] sm:$0xff] }
  0x57   : > { %612 = vst [vmem:[%s1147_s25 + $0xf0] sm:$0xff] %v484_v41  ;;  %v487_v52 = vadd.f32 %v1117_v2, %v358_v43  ;;  %v362_v53 = vmul.f32 %v1115_v1, %v233_v38  ;;  %v363_v54 = vmul.f32 %v1115_v1, %v234_v39  ;;  %613 = vst [vmem:[%s1147_s25 + $0xf8] sm:$0xff] %v485_v45  ;;  %v254_v41 = vld [vmem:[%s1108_s11 + $0x1d0] sm:$0xff]  ;;  %v256_v43 = vld [vmem:[%s1108_s11 + $0x1e0] sm:$0xff] }
  0x58   : > { %v488_v58 = vadd.f32 %v1117_v2, %v359_v46  ;;  %v489_v59 = vadd.f32 %v1117_v2, %v360_v47  ;;  %v490_v60 = vadd.f32 %v1117_v2, %v361_v48  ;;  %v364_v61 = vmul.f32 %v1115_v1, %v235_v44  ;;  %614 = vst [vmem:[%s1147_s25 + $0x100] sm:$0xff] %v486_v51  ;;  %v257_v48 = vld [vmem:[%s1108_s11 + $0x1e8] sm:$0xff] }
  0x59   : > { %615 = vst [vmem:[%s1147_s25 + $0x108] sm:$0xff] %v487_v52  ;;  %v491_v0 = vadd.f32 %v1117_v2, %v362_v53  ;;  %v492_v3 = vadd.f32 %v1117_v2, %v363_v54  ;;  %v365_v4 = vmul.f32 %v1115_v1, %v236_v49  ;;  %v366_v5 = vmul.f32 %v1115_v1, %v237_v50  ;;  %v258_v49 = vld [vmem:[%s1108_s11 + $0x1f0] sm:$0xff]  ;;  %v259_v54 = vld [vmem:[%s1108_s11 + $0x1f8] sm:$0xff] }
  0x5a   : > { %616 = vst [vmem:[%s1147_s25 + $0x110] sm:$0xff] %v488_v58  ;;  %617 = vst [vmem:[%s1147_s25 + $0x118] sm:$0xff] %v489_v59  ;;  %v493_v7 = vadd.f32 %v1117_v2, %v364_v61  ;;  %v367_v8 = vmul.f32 %v1115_v1, %v238_v55  ;;  %v368_v9 = vmul.f32 %v1115_v1, %v239_v56  ;;  %v260_v59 = vld [vmem:[%s1108_s11 + $0x200] sm:$0xff] }
  0x5b   : > { %618 = vst [vmem:[%s1147_s25 + $0x120] sm:$0xff] %v490_v60  ;;  %v369_v10 = vmul.f32 %v1115_v1, %v240_v57  ;;  %619 = vst [vmem:[%s1147_s25 + $0x128] sm:$0xff] %v491_v0  ;;  %v494_v13 = vadd.f32 %v1117_v2, %v365_v4  ;;  %v495_v14 = vadd.f32 %v1117_v2, %v366_v5  ;;  %v261_v60 = vld [vmem:[%s1108_s11 + $0x208] sm:$0xff]  ;;  %v263_v4 = vld [vmem:[%s1108_s11 + $0x218] sm:$0xff] }
  0x5c   : > { %620 = vst [vmem:[%s1147_s25 + $0x130] sm:$0xff] %v492_v3  ;;  %v370_v15 = vmul.f32 %v1115_v1, %v241_v62  ;;  %v371_v16 = vmul.f32 %v1115_v1, %v242_v63  ;;  %621 = vst [vmem:[%s1147_s25 + $0x138] sm:$0xff] %v493_v7  ;;  %v496_v20 = vadd.f32 %v1117_v2, %v367_v8  ;;  %v262_v3 = vld [vmem:[%s1108_s11 + $0x210] sm:$0xff]  ;;  %v264_v5 = vld [vmem:[%s1108_s11 + $0x220] sm:$0xff] }
  0x5d   : > { %v497_v21 = vadd.f32 %v1117_v2, %v368_v9  ;;  %v498_v22 = vadd.f32 %v1117_v2, %v369_v10  ;;  %v372_v23 = vmul.f32 %v1115_v1, %v243_v6  ;;  %622 = vst [vmem:[%s1147_s25 + $0x140] sm:$0xff] %v494_v13  ;;  %623 = vst [vmem:[%s1147_s25 + $0x148] sm:$0xff] %v495_v14  ;;  %v265_v10 = vld [vmem:[%s1108_s11 + $0x228] sm:$0xff] }
  0x5e   : > { %v499_v26 = vadd.f32 %v1117_v2, %v370_v15  ;;  %v500_v27 = vadd.f32 %v1117_v2, %v371_v16  ;;  %v373_v28 = vmul.f32 %v1115_v1, %v244_v11  ;;  %v374_v29 = vmul.f32 %v1115_v1, %v245_v12  ;;  %624 = vst [vmem:[%s1147_s25 + $0x150] sm:$0xff] %v496_v20  ;;  %v266_v11 = vld [vmem:[%s1108_s11 + $0x230] sm:$0xff]  ;;  %v267_v16 = vld [vmem:[%s1108_s11 + $0x238] sm:$0xff] }
  0x5f   : > { %625 = vst [vmem:[%s1147_s25 + $0x158] sm:$0xff] %v497_v21  ;;  %626 = vst [vmem:[%s1147_s25 + $0x160] sm:$0xff] %v498_v22  ;;  %v501_v31 = vadd.f32 %v1117_v2, %v372_v23  ;;  %v375_v32 = vmul.f32 %v1115_v1, %v246_v17  ;;  %v376_v33 = vmul.f32 %v1115_v1, %v247_v18  ;;  %v268_v21 = vld [vmem:[%s1108_s11 + $0x240] sm:$0xff]  ;;  %v269_v22 = vld [vmem:[%s1108_s11 + $0x248] sm:$0xff] }
  0x60   : > { %v377_v34 = vmul.f32 %v1115_v1, %v248_v19  ;;  %627 = vst [vmem:[%s1147_s25 + $0x168] sm:$0xff] %v499_v26  ;;  %628 = vst [vmem:[%s1147_s25 + $0x170] sm:$0xff] %v500_v27  ;;  %v502_v37 = vadd.f32 %v1117_v2, %v373_v28  ;;  %v503_v38 = vadd.f32 %v1117_v2, %v374_v29  ;;  %v270_v27 = vld [vmem:[%s1108_s11 + $0x250] sm:$0xff]  ;;  %v271_v28 = vld [vmem:[%s1108_s11 + $0x258] sm:$0xff] }
  0x61   : > { %v378_v39 = vmul.f32 %v1115_v1, %v249_v24  ;;  %v379_v40 = vmul.f32 %v1115_v1, %v250_v25  ;;  %629 = vst [vmem:[%s1147_s25 + $0x178] sm:$0xff] %v501_v31  ;;  %v504_v44 = vadd.f32 %v1117_v2, %v375_v32  ;;  %v505_v45 = vadd.f32 %v1117_v2, %v376_v33  ;;  %v272_v29 = vld [vmem:[%s1108_s11 + $0x260] sm:$0xff] }
  0x62   : > { %v506_v46 = vadd.f32 %v1117_v2, %v377_v34  ;;  %v380_v47 = vmul.f32 %v1115_v1, %v251_v30  ;;  %630 = vst [vmem:[%s1147_s25 + $0x180] sm:$0xff] %v502_v37  ;;  %631 = vst [vmem:[%s1147_s25 + $0x188] sm:$0xff] %v503_v38  ;;  %v381_v52 = vmul.f32 %v1115_v1, %v252_v35  ;;  %v273_v34 = vld [vmem:[%s1108_s11 + $0x268] sm:$0xff]  ;;  %v274_v35 = vld [vmem:[%s1108_s11 + $0x270] sm:$0xff] }
  0x63   : > { %v507_v50 = vadd.f32 %v1117_v2, %v378_v39  ;;  %v508_v51 = vadd.f32 %v1117_v2, %v379_v40  ;;  %v382_v53 = vmul.f32 %v1115_v1, %v253_v36  ;;  %632 = vst [vmem:[%s1147_s25 + $0x190] sm:$0xff] %v504_v44  ;;  %633 = vst [vmem:[%s1147_s25 + $0x198] sm:$0xff] %v505_v45  ;;  %v275_v40 = vld [vmem:[%s1108_s11 + $0x278] sm:$0xff]  ;;  %v276_v45 = vld [vmem:[%s1108_s11 + $0x280] sm:$0xff] }
  0x64   : > { %634 = vst [vmem:[%s1147_s25 + $0x1a0] sm:$0xff] %v506_v46  ;;  %v509_v55 = vadd.f32 %v1117_v2, %v380_v47  ;;  %v383_v56 = vmul.f32 %v1115_v1, %v254_v41  ;;  %v384_v57 = vmul.f32 %v1115_v1, %v255_v42  ;;  %v385_v58 = vmul.f32 %v1115_v1, %v256_v43  ;;  %v277_v46 = vld [vmem:[%s1108_s11 + $0x288] sm:$0xff] }
  0x65   : > { %635 = vst [vmem:[%s1147_s25 + $0x1a8] sm:$0xff] %v507_v50  ;;  %636 = vst [vmem:[%s1147_s25 + $0x1b0] sm:$0xff] %v508_v51  ;;  %v510_v61 = vadd.f32 %v1117_v2, %v381_v52  ;;  %v511_v62 = vadd.f32 %v1117_v2, %v382_v53  ;;  %v386_v63 = vmul.f32 %v1115_v1, %v257_v48  ;;  %v278_v51 = vld [vmem:[%s1108_s11 + $0x290] sm:$0xff]  ;;  %v279_v52 = vld [vmem:[%s1108_s11 + $0x298] sm:$0xff] }
  0x66   : > { %v387_v0 = vmul.f32 %v1115_v1, %v258_v49  ;;  %637 = vst [vmem:[%s1147_s25 + $0x1b8] sm:$0xff] %v509_v55  ;;  %v512_v6 = vadd.f32 %v1117_v2, %v383_v56  ;;  %v513_v7 = vadd.f32 %v1117_v2, %v384_v57  ;;  %v514_v8 = vadd.f32 %v1117_v2, %v385_v58  ;;  %v280_v53 = vld [vmem:[%s1108_s11 + $0x2a0] sm:$0xff]  ;;  %v281_v58 = vld [vmem:[%s1108_s11 + $0x2a8] sm:$0xff] }
  0x67   : > { %v388_v9 = vmul.f32 %v1115_v1, %v259_v54  ;;  %638 = vst [vmem:[%s1147_s25 + $0x1c0] sm:$0xff] %v510_v61  ;;  %639 = vst [vmem:[%s1147_s25 + $0x1c8] sm:$0xff] %v511_v62  ;;  %v515_v12 = vadd.f32 %v1117_v2, %v386_v63  ;;  %v389_v14 = vmul.f32 %v1115_v1, %v260_v59  ;;  %v282_v59 = vld [vmem:[%s1108_s11 + $0x2b0] sm:$0xff] }
  0x68   : > { %v516_v13 = vadd.f32 %v1117_v2, %v387_v0  ;;  %v390_v15 = vmul.f32 %v1115_v1, %v261_v60  ;;  %640 = vst [vmem:[%s1147_s25 + $0x1d0] sm:$0xff] %v512_v6  ;;  %641 = vst [vmem:[%s1147_s25 + $0x1d8] sm:$0xff] %v513_v7  ;;  %v391_v18 = vmul.f32 %v1115_v1, %v262_v3  ;;  %v283_v0 = vld [vmem:[%s1108_s11 + $0x2b8] sm:$0xff]  ;;  %v284_v7 = vld [vmem:[%s1108_s11 + $0x2c0] sm:$0xff] }
  0x69   : > { %642 = vst [vmem:[%s1147_s25 + $0x1e0] sm:$0xff] %v514_v8  ;;  %v517_v17 = vadd.f32 %v1117_v2, %v388_v9  ;;  %v392_v19 = vmul.f32 %v1115_v1, %v263_v4  ;;  %v393_v20 = vmul.f32 %v1115_v1, %v264_v5  ;;  %643 = vst [vmem:[%s1147_s25 + $0x1e8] sm:$0xff] %v515_v12  ;;  %v285_v8 = vld [vmem:[%s1108_s11 + $0x2c8] sm:$0xff] }
  0x6a   : > { %644 = vst [vmem:[%s1147_s25 + $0x1f0] sm:$0xff] %v516_v13  ;;  %v518_v23 = vadd.f32 %v1117_v2, %v389_v14  ;;  %v519_v24 = vadd.f32 %v1117_v2, %v390_v15  ;;  %v394_v25 = vmul.f32 %v1115_v1, %v265_v10  ;;  %v395_v26 = vmul.f32 %v1115_v1, %v266_v11  ;;  %v286_v13 = vld [vmem:[%s1108_s11 + $0x2d0] sm:$0xff]  ;;  %v287_v14 = vld [vmem:[%s1108_s11 + $0x2d8] sm:$0xff]  ;;  %v288_v15 = vld [vmem:[%s1108_s11 + $0x2e0] sm:$0xff] }
  0x6b   : > { %645 = vst [vmem:[%s1147_s25 + $0x1f8] sm:$0xff] %v517_v17  ;;  %v520_v30 = vadd.f32 %v1117_v2, %v391_v18  ;;  %v521_v31 = vadd.f32 %v1117_v2, %v392_v19  ;;  %v522_v32 = vadd.f32 %v1117_v2, %v393_v20  ;;  %v396_v33 = vmul.f32 %v1115_v1, %v267_v16  ;;  %v289_v20 = vld [vmem:[%s1108_s11 + $0x2e8] sm:$0xff] }
  0x6c   : > { %646 = vst [vmem:[%s1147_s25 + $0x200] sm:$0xff] %v518_v23  ;;  %647 = vst [vmem:[%s1147_s25 + $0x208] sm:$0xff] %v519_v24  ;;  %v523_v36 = vadd.f32 %v1117_v2, %v394_v25  ;;  %v524_v37 = vadd.f32 %v1117_v2, %v395_v26  ;;  %v397_v38 = vmul.f32 %v1115_v1, %v268_v21  ;;  %v290_v21 = vld [vmem:[%s1108_s11 + $0x2f0] sm:$0xff]  ;;  %v291_v26 = vld [vmem:[%s1108_s11 + $0x2f8] sm:$0xff] }
  0x6d   : > { %v398_v39 = vmul.f32 %v1115_v1, %v269_v22  ;;  %648 = vst [vmem:[%s1147_s25 + $0x210] sm:$0xff] %v520_v30  ;;  %649 = vst [vmem:[%s1147_s25 + $0x218] sm:$0xff] %v521_v31  ;;  %v525_v41 = vadd.f32 %v1117_v2, %v396_v33  ;;  %v399_v42 = vmul.f32 %v1115_v1, %v270_v27  ;;  %v292_v31 = vld [vmem:[%s1108_s11 + $0x300] sm:$0xff] }
  0x6e   : > { %650 = vst [vmem:[%s1147_s25 + $0x220] sm:$0xff] %v522_v32  ;;  %v400_v43 = vmul.f32 %v1115_v1, %v271_v28  ;;  %v401_v44 = vmul.f32 %v1115_v1, %v272_v29  ;;  %651 = vst [vmem:[%s1147_s25 + $0x228] sm:$0xff] %v523_v36  ;;  %v526_v47 = vadd.f32 %v1117_v2, %v397_v38  ;;  %v293_v32 = vld [vmem:[%s1108_s11 + $0x308] sm:$0xff]  ;;  %v295_v38 = vld [vmem:[%s1108_s11 + $0x318] sm:$0xff] }
  0x6f   : > { %652 = vst [vmem:[%s1147_s25 + $0x230] sm:$0xff] %v524_v37  ;;  %v527_v48 = vadd.f32 %v1117_v2, %v398_v39  ;;  %v402_v49 = vmul.f32 %v1115_v1, %v273_v34  ;;  %v403_v50 = vmul.f32 %v1115_v1, %v274_v35  ;;  %653 = vst [vmem:[%s1147_s25 + $0x238] sm:$0xff] %v525_v41  ;;  %v294_v37 = vld [vmem:[%s1108_s11 + $0x310] sm:$0xff]  ;;  %v296_v39 = vld [vmem:[%s1108_s11 + $0x320] sm:$0xff] }
  0x70   : > { %v528_v54 = vadd.f32 %v1117_v2, %v399_v42  ;;  %v529_v55 = vadd.f32 %v1117_v2, %v400_v43  ;;  %v530_v56 = vadd.f32 %v1117_v2, %v401_v44  ;;  %v404_v57 = vmul.f32 %v1115_v1, %v275_v40  ;;  %654 = vst [vmem:[%s1147_s25 + $0x240] sm:$0xff] %v526_v47  ;;  %v297_v44 = vld [vmem:[%s1108_s11 + $0x328] sm:$0xff] }
  0x71   : > { %655 = vst [vmem:[%s1147_s25 + $0x248] sm:$0xff] %v527_v48  ;;  %v531_v60 = vadd.f32 %v1117_v2, %v402_v49  ;;  %v532_v61 = vadd.f32 %v1117_v2, %v403_v50  ;;  %v405_v62 = vmul.f32 %v1115_v1, %v276_v45  ;;  %v406_v63 = vmul.f32 %v1115_v1, %v277_v46  ;;  %v298_v45 = vld [vmem:[%s1108_s11 + $0x330] sm:$0xff]  ;;  %v299_v50 = vld [vmem:[%s1108_s11 + $0x338] sm:$0xff] }
  0x72   : > { %656 = vst [vmem:[%s1147_s25 + $0x250] sm:$0xff] %v528_v54  ;;  %657 = vst [vmem:[%s1147_s25 + $0x258] sm:$0xff] %v529_v55  ;;  %v533_v3 = vadd.f32 %v1117_v2, %v404_v57  ;;  %v407_v4 = vmul.f32 %v1115_v1, %v278_v51  ;;  %v408_v5 = vmul.f32 %v1115_v1, %v279_v52  ;;  %v300_v55 = vld [vmem:[%s1108_s11 + $0x340] sm:$0xff] }
  0x73   : > { %658 = vst [vmem:[%s1147_s25 + $0x260] sm:$0xff] %v530_v56  ;;  %v409_v6 = vmul.f32 %v1115_v1, %v280_v53  ;;  %659 = vst [vmem:[%s1147_s25 + $0x268] sm:$0xff] %v531_v60  ;;  %v534_v9 = vadd.f32 %v1117_v2, %v405_v62  ;;  %v535_v10 = vadd.f32 %v1117_v2, %v406_v63  ;;  %v301_v56 = vld [vmem:[%s1108_s11 + $0x348] sm:$0xff]  ;;  %v303_v62 = vld [vmem:[%s1108_s11 + $0x358] sm:$0xff] }
  0x74   : > { %660 = vst [vmem:[%s1147_s25 + $0x270] sm:$0xff] %v532_v61  ;;  %v410_v11 = vmul.f32 %v1115_v1, %v281_v58  ;;  %v411_v12 = vmul.f32 %v1115_v1, %v282_v59  ;;  %661 = vst [vmem:[%s1147_s25 + $0x278] sm:$0xff] %v533_v3  ;;  %v536_v16 = vadd.f32 %v1117_v2, %v407_v4  ;;  %v302_v61 = vld [vmem:[%s1108_s11 + $0x350] sm:$0xff]  ;;  %v304_v63 = vld [vmem:[%s1108_s11 + $0x360] sm:$0xff] }
  0x75   : > { %v537_v17 = vadd.f32 %v1117_v2, %v408_v5  ;;  %v538_v18 = vadd.f32 %v1117_v2, %v409_v6  ;;  %v412_v19 = vmul.f32 %v1115_v1, %v283_v0  ;;  %662 = vst [vmem:[%s1147_s25 + $0x280] sm:$0xff] %v534_v9  ;;  %663 = vst [vmem:[%s1147_s25 + $0x288] sm:$0xff] %v535_v10  ;;  %v305_v6 = vld [vmem:[%s1108_s11 + $0x368] sm:$0xff] }
  0x76   : > { %v539_v22 = vadd.f32 %v1117_v2, %v410_v11  ;;  %v540_v23 = vadd.f32 %v1117_v2, %v411_v12  ;;  %v413_v24 = vmul.f32 %v1115_v1, %v284_v7  ;;  %v414_v25 = vmul.f32 %v1115_v1, %v285_v8  ;;  %664 = vst [vmem:[%s1147_s25 + $0x290] sm:$0xff] %v536_v16  ;;  %v306_v7 = vld [vmem:[%s1108_s11 + $0x370] sm:$0xff]  ;;  %v307_v12 = vld [vmem:[%s1108_s11 + $0x378] sm:$0xff] }
  0x77   : > { %665 = vst [vmem:[%s1147_s25 + $0x298] sm:$0xff] %v537_v17  ;;  %666 = vst [vmem:[%s1147_s25 + $0x2a0] sm:$0xff] %v538_v18  ;;  %v541_v27 = vadd.f32 %v1117_v2, %v412_v19  ;;  %v415_v28 = vmul.f32 %v1115_v1, %v286_v13  ;;  %v416_v29 = vmul.f32 %v1115_v1, %v287_v14  ;;  %v308_v17 = vld [vmem:[%s1108_s11 + $0x380] sm:$0xff]  ;;  %v309_v18 = vld [vmem:[%s1108_s11 + $0x388] sm:$0xff] }
  0x78   : > { %v417_v30 = vmul.f32 %v1115_v1, %v288_v15  ;;  %667 = vst [vmem:[%s1147_s25 + $0x2a8] sm:$0xff] %v539_v22  ;;  %668 = vst [vmem:[%s1147_s25 + $0x2b0] sm:$0xff] %v540_v23  ;;  %v542_v33 = vadd.f32 %v1117_v2, %v413_v24  ;;  %v543_v34 = vadd.f32 %v1117_v2, %v414_v25  ;;  %v310_v23 = vld [vmem:[%s1108_s11 + $0x390] sm:$0xff]  ;;  %v311_v24 = vld [vmem:[%s1108_s11 + $0x398] sm:$0xff] }
  0x79   : > { %v418_v35 = vmul.f32 %v1115_v1, %v289_v20  ;;  %v419_v36 = vmul.f32 %v1115_v1, %v290_v21  ;;  %669 = vst [vmem:[%s1147_s25 + $0x2b8] sm:$0xff] %v541_v27  ;;  %v544_v40 = vadd.f32 %v1117_v2, %v415_v28  ;;  %v545_v41 = vadd.f32 %v1117_v2, %v416_v29  ;;  %v312_v25 = vld [vmem:[%s1108_s11 + $0x3a0] sm:$0xff] }
  0x7a   : > { %v546_v42 = vadd.f32 %v1117_v2, %v417_v30  ;;  %v420_v43 = vmul.f32 %v1115_v1, %v291_v26  ;;  %670 = vst [vmem:[%s1147_s25 + $0x2c0] sm:$0xff] %v542_v33  ;;  %671 = vst [vmem:[%s1147_s25 + $0x2c8] sm:$0xff] %v543_v34  ;;  %v421_v48 = vmul.f32 %v1115_v1, %v292_v31  ;;  %v313_v30 = vld [vmem:[%s1108_s11 + $0x3a8] sm:$0xff]  ;;  %v314_v31 = vld [vmem:[%s1108_s11 + $0x3b0] sm:$0xff] }
  0x7b   : > { %v547_v46 = vadd.f32 %v1117_v2, %v418_v35  ;;  %v548_v47 = vadd.f32 %v1117_v2, %v419_v36  ;;  %v422_v49 = vmul.f32 %v1115_v1, %v293_v32  ;;  %672 = vst [vmem:[%s1147_s25 + $0x2d0] sm:$0xff] %v544_v40  ;;  %673 = vst [vmem:[%s1147_s25 + $0x2d8] sm:$0xff] %v545_v41  ;;  %v315_v36 = vld [vmem:[%s1108_s11 + $0x3b8] sm:$0xff]  ;;  %v316_v41 = vld [vmem:[%s1108_s11 + $0x3c0] sm:$0xff] }
  0x7c   : > { %674 = vst [vmem:[%s1147_s25 + $0x2e0] sm:$0xff] %v546_v42  ;;  %v549_v51 = vadd.f32 %v1117_v2, %v420_v43  ;;  %v423_v52 = vmul.f32 %v1115_v1, %v294_v37  ;;  %v424_v53 = vmul.f32 %v1115_v1, %v295_v38  ;;  %v425_v54 = vmul.f32 %v1115_v1, %v296_v39  ;;  %v317_v42 = vld [vmem:[%s1108_s11 + $0x3c8] sm:$0xff] }
  0x7d   : > { %675 = vst [vmem:[%s1147_s25 + $0x2e8] sm:$0xff] %v547_v46  ;;  %676 = vst [vmem:[%s1147_s25 + $0x2f0] sm:$0xff] %v548_v47  ;;  %v550_v57 = vadd.f32 %v1117_v2, %v421_v48  ;;  %v551_v58 = vadd.f32 %v1117_v2, %v422_v49  ;;  %v426_v59 = vmul.f32 %v1115_v1, %v297_v44  ;;  %v318_v47 = vld [vmem:[%s1108_s11 + $0x3d0] sm:$0xff]  ;;  %v319_v48 = vld [vmem:[%s1108_s11 + $0x3d8] sm:$0xff] }
  0x7e   : > { %v427_v60 = vmul.f32 %v1115_v1, %v298_v45  ;;  %677 = vst [vmem:[%s1147_s25 + $0x2f8] sm:$0xff] %v549_v51  ;;  %v552_v0 = vadd.f32 %v1117_v2, %v423_v52  ;;  %v553_v3 = vadd.f32 %v1117_v2, %v424_v53  ;;  %v554_v4 = vadd.f32 %v1117_v2, %v425_v54  ;;  %v320_v49 = vld [vmem:[%s1108_s11 + $0x3e0] sm:$0xff]  ;;  %v321_v54 = vld [vmem:[%s1108_s11 + $0x3e8] sm:$0xff] }
  0x7f   : > { %v428_v5 = vmul.f32 %v1115_v1, %v299_v50  ;;  %678 = vst [vmem:[%s1147_s25 + $0x300] sm:$0xff] %v550_v57  ;;  %679 = vst [vmem:[%s1147_s25 + $0x308] sm:$0xff] %v551_v58  ;;  %v555_v8 = vadd.f32 %v1117_v2, %v426_v59  ;;  %v429_v10 = vmul.f32 %v1115_v1, %v300_v55  ;;  %v322_v55 = vld [vmem:[%s1108_s11 + $0x3f0] sm:$0xff] }
  0x80   : > { %v556_v9 = vadd.f32 %v1117_v2, %v427_v60  ;;  %v430_v11 = vmul.f32 %v1115_v1, %v301_v56  ;;  %680 = vst [vmem:[%s1147_s25 + $0x310] sm:$0xff] %v552_v0  ;;  %681 = vst [vmem:[%s1147_s25 + $0x318] sm:$0xff] %v553_v3  ;;  %v431_v14 = vmul.f32 %v1115_v1, %v302_v61  ;;  %v323_v60 = vld [vmem:[%s1108_s11 + $0x3f8] sm:$0xff] }
  0x81   : > { %682 = vst [vmem:[%s1147_s25 + $0x320] sm:$0xff] %v554_v4  ;;  %v557_v13 = vadd.f32 %v1117_v2, %v428_v5  ;;  %v432_v15 = vmul.f32 %v1115_v1, %v303_v62  ;;  %v433_v16 = vmul.f32 %v1115_v1, %v304_v63  ;;  %683 = vst [vmem:[%s1147_s25 + $0x328] sm:$0xff] %v555_v8 }
  0x82   : > { %684 = vst [vmem:[%s1147_s25 + $0x330] sm:$0xff] %v556_v9  ;;  %v558_v19 = vadd.f32 %v1117_v2, %v429_v10  ;;  %v559_v20 = vadd.f32 %v1117_v2, %v430_v11  ;;  %v434_v21 = vmul.f32 %v1115_v1, %v305_v6  ;;  %v435_v22 = vmul.f32 %v1115_v1, %v306_v7 }
  0x83   : > { %685 = vst [vmem:[%s1147_s25 + $0x338] sm:$0xff] %v557_v13  ;;  %v560_v26 = vadd.f32 %v1117_v2, %v431_v14  ;;  %v561_v27 = vadd.f32 %v1117_v2, %v432_v15  ;;  %v562_v28 = vadd.f32 %v1117_v2, %v433_v16  ;;  %v436_v29 = vmul.f32 %v1115_v1, %v307_v12 }
  0x84   : > { %686 = vst [vmem:[%s1147_s25 + $0x340] sm:$0xff] %v558_v19  ;;  %687 = vst [vmem:[%s1147_s25 + $0x348] sm:$0xff] %v559_v20  ;;  %v563_v32 = vadd.f32 %v1117_v2, %v434_v21  ;;  %v564_v33 = vadd.f32 %v1117_v2, %v435_v22  ;;  %v437_v34 = vmul.f32 %v1115_v1, %v308_v17 }
  0x85   : > { %v438_v35 = vmul.f32 %v1115_v1, %v309_v18  ;;  %688 = vst [vmem:[%s1147_s25 + $0x350] sm:$0xff] %v560_v26  ;;  %689 = vst [vmem:[%s1147_s25 + $0x358] sm:$0xff] %v561_v27  ;;  %v565_v37 = vadd.f32 %v1117_v2, %v436_v29  ;;  %v439_v38 = vmul.f32 %v1115_v1, %v310_v23 }
  0x86   : > { %690 = vst [vmem:[%s1147_s25 + $0x360] sm:$0xff] %v562_v28  ;;  %v440_v39 = vmul.f32 %v1115_v1, %v311_v24  ;;  %v441_v40 = vmul.f32 %v1115_v1, %v312_v25  ;;  %691 = vst [vmem:[%s1147_s25 + $0x368] sm:$0xff] %v563_v32  ;;  %v566_v43 = vadd.f32 %v1117_v2, %v437_v34 }
  0x87   : > { %692 = vst [vmem:[%s1147_s25 + $0x370] sm:$0xff] %v564_v33  ;;  %v567_v44 = vadd.f32 %v1117_v2, %v438_v35  ;;  %v442_v45 = vmul.f32 %v1115_v1, %v313_v30  ;;  %v443_v46 = vmul.f32 %v1115_v1, %v314_v31  ;;  %693 = vst [vmem:[%s1147_s25 + $0x378] sm:$0xff] %v565_v37 }
  0x88   : > { %v568_v50 = vadd.f32 %v1117_v2, %v439_v38  ;;  %v569_v51 = vadd.f32 %v1117_v2, %v440_v39  ;;  %v570_v52 = vadd.f32 %v1117_v2, %v441_v40  ;;  %v444_v53 = vmul.f32 %v1115_v1, %v315_v36  ;;  %694 = vst [vmem:[%s1147_s25 + $0x380] sm:$0xff] %v566_v43 }
  0x89   : > { %695 = vst [vmem:[%s1147_s25 + $0x388] sm:$0xff] %v567_v44  ;;  %v571_v56 = vadd.f32 %v1117_v2, %v442_v45  ;;  %v572_v57 = vadd.f32 %v1117_v2, %v443_v46  ;;  %v445_v58 = vmul.f32 %v1115_v1, %v316_v41  ;;  %v446_v59 = vmul.f32 %v1115_v1, %v317_v42 }
  0x8a   : > { %696 = vst [vmem:[%s1147_s25 + $0x390] sm:$0xff] %v568_v50  ;;  %697 = vst [vmem:[%s1147_s25 + $0x398] sm:$0xff] %v569_v51  ;;  %v573_v61 = vadd.f32 %v1117_v2, %v444_v53  ;;  %v447_v62 = vmul.f32 %v1115_v1, %v318_v47  ;;  %v448_v63 = vmul.f32 %v1115_v1, %v319_v48 }
  0x8b   : > { %698 = vst [vmem:[%s1147_s25 + $0x3a0] sm:$0xff] %v570_v52  ;;  %v449_v0 = vmul.f32 %v1115_v1, %v320_v49  ;;  %699 = vst [vmem:[%s1147_s25 + $0x3a8] sm:$0xff] %v571_v56  ;;  %v574_v3 = vadd.f32 %v1117_v2, %v445_v58  ;;  %v575_v4 = vadd.f32 %v1117_v2, %v446_v59 }
  0x8c   : > { %700 = vst [vmem:[%s1147_s25 + $0x3b0] sm:$0xff] %v572_v57  ;;  %v450_v5 = vmul.f32 %v1115_v1, %v321_v54  ;;  %v451_v6 = vmul.f32 %v1115_v1, %v322_v55  ;;  %701 = vst [vmem:[%s1147_s25 + $0x3b8] sm:$0xff] %v573_v61  ;;  %v576_v7 = vadd.f32 %v1117_v2, %v447_v62 }
  0x8d   : > { %v577_v8 = vadd.f32 %v1117_v2, %v448_v63  ;;  %v578_v9 = vadd.f32 %v1117_v2, %v449_v0  ;;  %v452_v10 = vmul.f32 %v1115_v1, %v323_v60  ;;  %702 = vst [vmem:[%s1147_s25 + $0x3c0] sm:$0xff] %v574_v3  ;;  %703 = vst [vmem:[%s1147_s25 + $0x3c8] sm:$0xff] %v575_v4 }
  0x8e   : > { %v579_v11 = vadd.f32 %v1117_v2, %v450_v5  ;;  %v580_v12 = vadd.f32 %v1117_v2, %v451_v6  ;;  %704 = vst [vmem:[%s1147_s25 + $0x3d0] sm:$0xff] %v576_v7 }
  0x8f   : > { %705 = vst [vmem:[%s1147_s25 + $0x3d8] sm:$0xff] %v577_v8  ;;  %706 = vst [vmem:[%s1147_s25 + $0x3e0] sm:$0xff] %v578_v9  ;;  %v581_v1 = vadd.f32 %v1117_v2, %v452_v10 }
  0x90   : > { %707 = vst [vmem:[%s1147_s25 + $0x3e8] sm:$0xff] %v579_v11  ;;  %708 = vst [vmem:[%s1147_s25 + $0x3f0] sm:$0xff] %v580_v12 }
  0x91   : > { %709 = vst [vmem:[%s1147_s25 + $0x3f8] sm:$0xff] %v581_v1 }
  0x92   : > { %911 = shalt.err (!%p908_p2)
}
  0x93   : > { %s912_s24 = scalar_lea.hbm %s1632_s13, 16384  ;;  %s916_s30 = scalar_lea.hbm %s1688_s3, 32768 }
  0x94   : > { %p913_p4 = scmp.ne.s32.totalorder %s1632_s13, %s912_s24  ;;  %p917_p9 = scmp.lt.u32.totalorder %s1632_s13, %s1688_s3 }
  0x95   : > { %p918_p1 = scmp.lt.u32.totalorder %s916_s30, %s912_s24  ;;  %p920_p6 = scmp.lt.u32.totalorder %s912_s24, %s1632_s13 }
  0x96   : > { %p914_p5 = pnand %p913_p4, %p1695_p11 }
  0x97   : > { %p919_p3 = por %p918_p1, %p917_p9 }
  0x98   : > { %p915_p7 = pneg %p914_p5 }
  0x99   : > { %p921_p12 = por %p920_p6, %p919_p3 }
  0x9b   : > { %p922_p13 = pnand %p921_p12, %p915_p7 }
  0x9d   : > { %925 = shalt.err (!%p922_p13)
}
  0x9e   : > { %s970_s11 = smov 512   ;;  %s971_s6 = smov 32  }
  0x9f   : > { %820 = dma.vmem_to_hbm [thread:$0]  (%p1695_p11), %s1634_s10, 16384, %s1632_s13, %s711_s14, %s970_s11, %s970_s11, %s971_s6  }
  0xa0 PF: > { %s740_s8 = sand.u32 1, %s952_s16   ;;  %p1696_p8 = scmp.ne.s32.totalorder %s1693_s27, 0 }
  0xa1   : > { %p1697_p10 = scmp.ge.s32.totalorder %s964_s19, 2  ;;  %s741_s25 = scalar_lea.sflag [#allocation6], %s740_s8 }
  0xa3   : > { %p827_p0 = pnand %p1697_p10, %p1696_p8 }
  0xa5   : > { %947 = dma.done.wait (!%p827_p0), %s741_s25, 16384  }
  0xa6   : > { %949 = vsyncadd (!%p827_p0), %s741_s25, 4294950912  ;;  %p18_p2 = scmp.ge.s32.totalorder %s1023_s20, 4   ;;  %s1698_s16 = smov %s956_s17 }
  0xa7   : > { %s1699_s17 = smov %s960_s18  ;;  %s1700_s18 = smov %s1035_s23 }
  0xa8   : > { %s1701_s19 = smov %s1023_s20  ;;  %20 = sbr.rel (!%p18_p2) target bundleno = 8 (0x8), region = 77 }
  0xaf   :  { %746 = vsyncpa [#allocation5], 1 }
  0xb0   :  { %748 = vsyncpa [#allocation5 + $0x1], 1 }
  0xb1   :  { %749 = vsyncpa [#allocation6], 1 }
  0xb2   :  { %751 = vsyncpa [#allocation6 + $0x1], 1 }

</bundles_post_ra>
